<compile_context>
chip_gen: v7x
topology: tpu7x:2x2x1
jax: 0.10.0
libtpu: 0.0.40
codegen_flags: <defaults>
</compile_context>

<pallas_src>
import functools

import numpy as np
import jax
import jax.numpy as jnp
from jax.experimental import pallas as pl
from jax.experimental.pallas import tpu as pltpu


# ----------------------------------------------------------------------------
# Pallas kernel: tiled all-pairs equality + accumulated membership mask
# ----------------------------------------------------------------------------
def _membership_kernel(a_ref, b_ref, eq_ref, mask_ref):
    # grid = (i over N tiles [parallel], j over M tiles [arbitrary/reduction])
    j = pl.program_id(1)

    @pl.when(j == 0)
    def _init():
        mask_ref[...] = jnp.zeros_like(mask_ref)

    a = a_ref[...]                                  # (TN, 1)  int32, sublanes
    b = b_ref[...]                                  # (1, TM)  int32, lanes
    cmp = a == b                                    # (TN, TM) bool
    eq_ref[...] = cmp.astype(jnp.int8)              # 4x smaller HBM writeback
    # OR-reduce along lanes, accumulate across M tiles; broadcast to a
    # lane-dense (TN, 128) block so the store is an unmasked vst.
    row_any = jnp.max(cmp.astype(jnp.int32), axis=1, keepdims=True)   # (TN, 1)
    mask_ref[...] = jnp.maximum(mask_ref[...], row_any)               # (TN, 128)


@functools.lru_cache(maxsize=None)
def _build_membership_call(n_pad, m_pad, tn, tm):
    grid = (n_pad // tn, m_pad // tm)
    call = pl.pallas_call(
        _membership_kernel,
        out_shape=(
            jax.ShapeDtypeStruct((n_pad, m_pad), jnp.int8),
            jax.ShapeDtypeStruct((n_pad, 128), jnp.int32),
        ),
        grid=grid,
        in_specs=[
            pl.BlockSpec((tn, 1), lambda i, j: (i, 0)),
            pl.BlockSpec((1, tm), lambda i, j: (0, j)),
        ],
        out_specs=(
            pl.BlockSpec((tn, tm), lambda i, j: (i, j)),
            pl.BlockSpec((tn, 128), lambda i, j: (i, 0)),   # accumulator over j
        ),
        compiler_params=pltpu.CompilerParams(
            dimension_semantics=("parallel", "arbitrary"),
            vmem_limit_bytes=32 * 1024 * 1024,
        ),
    )
    return jax.jit(call)


def _ceil_to(x, m):
    return max(m, ((x + m - 1) // m) * m)


# tile budget (int8 eq): 256 x 2048 = 512 KiB/buffer, x2 double-buffer = 1 MiB
# -> comfortably under scoped VMEM on v5e/v6e and on v7x's 64 MiB part.
_TN_MAX = 256     # multiple of 32 (int8 sublane packing)
_TM_MAX = 2048    # multiple of 128 (lane width)


def membership(a_list, b_list):
    """eq[n, m] = (a[i] == b[j]) as int8, mask[n] = any_j eq[i, j]."""
    n, m = len(a_list), len(b_list)
    if n == 0 or m == 0:
        return np.zeros((n, m), dtype=np.int8), np.zeros((n,), dtype=np.int32)

    a_arr = np.asarray(a_list, dtype=np.int64)
    b_arr = np.asarray(b_list, dtype=np.int64)
    # padding sentinels are -1 / -2; real node IDs must be non-negative
    assert a_arr.min() >= 0 and b_arr.min() >= 0, "node IDs must be >= 0"

    # dedupe both node lists on the host; map results back via inverse index
    a_u, a_inv = np.unique(a_arr, return_inverse=True)
    b_u, b_inv = np.unique(b_arr, return_inverse=True)
    nu, mu = len(a_u), len(b_u)

    tn = min(_TN_MAX, _ceil_to(nu, 32))
    tm = min(_TM_MAX, _ceil_to(mu, 128))
    n_pad = _ceil_to(nu, tn)
    m_pad = _ceil_to(mu, tm)

    a_pad = np.full((n_pad, 1), -1, dtype=np.int32)
    b_pad = np.full((1, m_pad), -2, dtype=np.int32)
    a_pad[:nu, 0] = a_u.astype(np.int32)
    b_pad[0, :mu] = b_u.astype(np.int32)

    fn = _build_membership_call(n_pad, m_pad, tn, tm)
    eq_dev, mask_dev = fn(jnp.asarray(a_pad), jnp.asarray(b_pad))
    jax.block_until_ready((eq_dev, mask_dev))

    eq_u = np.asarray(eq_dev)[:nu, :mu]
    mask_u = np.asarray(mask_dev)[:nu, 0]
    # undo the dedup: eq[i, j] = eq_u[a_inv[i], b_inv[j]]
    eq = eq_u[np.ix_(a_inv, b_inv)]
    mask = mask_u[a_inv]
    return eq, mask


# ----------------------------------------------------------------------------
# Module port
# ----------------------------------------------------------------------------
class SeparateSubgraph:
    """JAX/Pallas port of HCMGNN Separate_subgraph."""

    def get_edges(self, edges1, edges2):
        src1, dst1 = list(edges1[0]), list(edges1[1])
        src2, dst2 = list(edges2[0]), list(edges2[1])
        eq, mask = membership(dst1, src2)            # Pallas hot path
        new_edges = [[list() for _ in range(2)] for _ in range(2)]
        seen = set()                                 # mirrors "not in new_edges[1][0]"
        for i in range(len(src1)):
            if mask[i]:
                new_edges[0][0].append(src1[i])
                new_edges[0][1].append(dst1[i])
                if dst1[i] not in seen:
                    seen.add(dst1[i])
                    for j in np.nonzero(eq[i])[0]:
                        new_edges[1][0].append(dst1[i])
                        new_edges[1][1].append(dst2[int(j)])
        return new_edges

    def forward(self, hg, metapath):
        new_triplets_edge = []
        metapath_list = [f'{metapath[i]}_{metapath[i + 1]}'
                         for i in range(len(metapath) - 1)]
        edges = [[list(map(int, hg['edges'][mp][j])) for j in range(2)]
                 for mp in metapath_list]
        if len(metapath_list) == 2:
            new_edges = self.get_edges(edges[0], edges[1])
        elif len(metapath_list) == 3:
            new_edges = self.get_edges(edges[0], edges[1])
            new_edges1 = self.get_edges(new_edges[1], edges[2])
            new_edges.append(new_edges1[1])
        for path in metapath_list:
            for cet in hg['canonical_etypes']:
                if path in cet:
                    new_triplets_edge.append(cet)
        graph_data = {}
        for i in range(len(metapath_list)):
            graph_data[new_triplets_edge[i]] = (new_edges[i][0], new_edges[i][1])
        # TODO(synk): dgl.heterograph construction has no Pallas/JAX equivalent;
        # return the per-relation edge dict (the graph's defining data) instead.
        return graph_data


# ----------------------------------------------------------------------------
# Pure-python reference (verbatim port of the torch module's get_edges logic)
# ----------------------------------------------------------------------------
def _ref_get_edges(edges1, edges2):
    new_edges = [[list() for _ in range(2)] for _ in range(2)]
    for i in range(len(edges1[0])):
        if edges1[1][i] in edges2[0]:
            new_edges[0][0].append(edges1[0][i])
            new_edges[0][1].append(edges1[1][i])
            index = [m for m, x in enumerate(edges2[0]) if x == edges1[1][i]]
            if edges1[1][i] not in new_edges[1][0]:
                for j in range(len(index)):
                    new_edges[1][0].append(edges1[1][i])
                    new_edges[1][1].append(edges2[1][index[j]])
    return new_edges


def _ref_forward(hg, metapath):
    metapath_list = [f'{metapath[i]}_{metapath[i + 1]}'
                     for i in range(len(metapath) - 1)]
    edges = [[list(map(int, hg['edges'][mp][j])) for j in range(2)]
             for mp in metapath_list]
    if len(metapath_list) == 2:
        new_edges = _ref_get_edges(edges[0], edges[1])
    elif len(metapath_list) == 3:
        new_edges = _ref_get_edges(edges[0], edges[1])
        new_edges1 = _ref_get_edges(new_edges[1], edges[2])
        new_edges.append(new_edges1[1])
    new_triplets_edge = []
    for path in metapath_list:
        for cet in hg['canonical_etypes']:
            if path in cet:
                new_triplets_edge.append(cet)
    graph_data = {}
    for i in range(len(metapath_list)):
        graph_data[new_triplets_edge[i]] = (new_edges[i][0], new_edges[i][1])
    return graph_data


# ----------------------------------------------------------------------------
# Demo
# ----------------------------------------------------------------------------
if __name__ == "__main__":
    key = jax.random.PRNGKey(0)
    k1, k2, k3, k4, k5, k6, k7, k8 = jax.random.split(key, 8)

    # --- full-module test (small metapath walk, exercises both hops) --------
    E1, E2, E3 = 12, 14, 10
    src_ab = jax.random.randint(k1, (E1,), 0, 5)
    dst_ab = jax.random.randint(k2, (E1,), 0, 6)
    src_bc = jax.random.randint(k3, (E2,), 0, 6)
    dst_bc = jax.random.randint(k4, (E2,), 0, 4)
    src_cd = jax.random.randint(k5, (E3,), 0, 4)
    dst_cd = jax.random.randint(k6, (E3,), 0, 5)

    hg = {
        'canonical_etypes': [('A', 'a_b', 'B'),
                             ('B', 'b_c', 'C'),
                             ('C', 'c_d', 'D')],
        'edges': {
            'a_b': ([int(v) for v in np.asarray(src_ab)],
                    [int(v) for v in np.asarray(dst_ab)]),
            'b_c': ([int(v) for v in np.asarray(src_bc)],
                    [int(v) for v in np.asarray(dst_bc)]),
            'c_d': ([int(v) for v in np.asarray(src_cd)],
                    [int(v) for v in np.asarray(dst_cd)]),
        },
    }
    metapath = ['a', 'b', 'c', 'd']   # 3-hop metapath -> exercises both branches

    module = SeparateSubgraph()
    out = module.forward(hg, metapath)
    ref = _ref_forward(hg, metapath)

    assert set(out.keys()) == set(ref.keys())
    for k in ref:
        assert [int(x) for x in out[k][0]] == [int(x) for x in ref[k][0]], k
        assert [int(x) for x in out[k][1]] == [int(x) for x in ref[k][1]], k

    # --- multi-tile membership test (exercises tiled grid + mask accum) -----
    a_big = np.asarray(jax.random.randint(k7, (600,), 0, 5000))
    b_big = np.asarray(jax.random.randint(k8, (3000,), 0, 5000))
    eq_big, mask_big = membership([int(v) for v in a_big],
                                  [int(v) for v in b_big])
    eq_np = (a_big[:, None] == b_big[None, :])
    assert np.array_equal(eq_big.astype(bool), eq_np)
    assert np.array_equal(mask_big.astype(bool), eq_np.any(axis=1))

    print("KERNEL_OK")
</pallas_src>

<mosaic_0001>
module attributes {stable_mosaic.version = 11 : i64} {
  func.func @_membership_kernel(%arg0: i32, %arg1: i32, %arg2: memref<32x1xi32, #tpu.memory_space<vmem>>, %arg3: memref<1x128xi32, #tpu.memory_space<vmem>>, %arg4: memref<32x128xi8, #tpu.memory_space<vmem>>, %arg5: memref<32x128xi32, #tpu.memory_space<vmem>>) attributes {dimension_semantics = [#tpu.dimension_semantics<parallel>, #tpu.dimension_semantics<arbitrary>], iteration_bounds = array<i64: 1, 1>, scalar_prefetch = 0 : i64, scratch_operands = 0 : i64, tpu.core_type = #tpu.core_type<tc>, window_params = [{transform_indices = @transform_0, window_bounds = array<i64: 32, 1>}, {transform_indices = @transform_1, window_bounds = array<i64: 1, 128>}, {transform_indices = @transform_2, window_bounds = array<i64: 32, 128>}, {transform_indices = @transform_3, window_bounds = array<i64: 32, 128>}]} {
    %c0_i32 = arith.constant 0 : i32
    %0 = arith.cmpi eq, %arg1, %c0_i32 : i32
    %1 = arith.extui %0 : i1 to i32
    %c0_i32_0 = arith.constant 0 : i32
    %2 = arith.cmpi ne, %1, %c0_i32_0 : i32
    scf.if %2 {
      %c0_i32_10 = arith.constant 0 : i32
      %17 = vector.broadcast %c0_i32_10 : i32 to vector<32x128xi32>
      %c0_11 = arith.constant 0 : index
      %c0_12 = arith.constant 0 : index
      %18 = vector.load %arg5[%c0_11, %c0_12] : memref<32x128xi32, #tpu.memory_space<vmem>>, vector<32x128xi32>
      tpu.vector_store %arg5[%c0_11, %c0_12], %17 {strides = array<i32>} : memref<32x128xi32, #tpu.memory_space<vmem>>, vector<32x128xi32>,
    } else {
    }
    %c0 = arith.constant 0 : index
    %c0_1 = arith.constant 0 : index
    %3 = vector.load %arg2[%c0, %c0_1] : memref<32x1xi32, #tpu.memory_space<vmem>>, vector<32x1xi32>
    %c0_2 = arith.constant 0 : index
    %c0_3 = arith.constant 0 : index
    %4 = vector.load %arg3[%c0_2, %c0_3] : memref<1x128xi32, #tpu.memory_space<vmem>>, vector<1x128xi32>
    %5 = vector.broadcast %3 : vector<32x1xi32> to vector<32x128xi32>
    %6 = vector.broadcast %4 : vector<1x128xi32> to vector<32x128xi32>
    %7 = arith.cmpi eq, %5, %6 : vector<32x128xi32>
    %8 = arith.extui %7 : vector<32x128xi1> to vector<32x128xi8>
    %c0_4 = arith.constant 0 : index
    %c0_5 = arith.constant 0 : index
    %9 = vector.load %arg4[%c0_4, %c0_5] : memref<32x128xi8, #tpu.memory_space<vmem>>, vector<32x128xi8>
    tpu.vector_store %arg4[%c0_4, %c0_5], %8 {strides = array<i32>} : memref<32x128xi8, #tpu.memory_space<vmem>>, vector<32x128xi8>,
    %10 = arith.extui %7 : vector<32x128xi1> to vector<32x128xi32>
    %cst = arith.constant dense<-2147483648> : vector<32xi32>
    %11 = vector.multi_reduction <maxsi>, %10, %cst [1] : vector<32x128xi32> to vector<32xi32>
    %12 = vector.shape_cast %11 : vector<32xi32> to vector<32x1xi32>
    %c0_6 = arith.constant 0 : index
    %c0_7 = arith.constant 0 : index
    %13 = vector.load %arg5[%c0_6, %c0_7] : memref<32x128xi32, #tpu.memory_space<vmem>>, vector<32x128xi32>
    %14 = vector.broadcast %12 : vector<32x1xi32> to vector<32x128xi32>
    %15 = arith.maxsi %13, %14 : vector<32x128xi32>
    %c0_8 = arith.constant 0 : index
    %c0_9 = arith.constant 0 : index
    %16 = vector.load %arg5[%c0_8, %c0_9] : memref<32x128xi32, #tpu.memory_space<vmem>>, vector<32x128xi32>
    tpu.vector_store %arg5[%c0_8, %c0_9], %15 {strides = array<i32>} : memref<32x128xi32, #tpu.memory_space<vmem>>, vector<32x128xi32>,
    return
  }
  func.func @transform_0(%arg0: i32, %arg1: i32) -> (i32, i32) {
    %c0_i32 = arith.constant 0 : i32
    %c0_i32_0 = arith.constant 0 : i32
    return %arg0, %c0_i32 : i32, i32
  }
  func.func @transform_1(%arg0: i32, %arg1: i32) -> (i32, i32) {
    %c0_i32 = arith.constant 0 : i32
    %c0_i32_0 = arith.constant 0 : i32
    return %c0_i32, %arg1 : i32, i32
  }
  func.func @transform_2(%arg0: i32, %arg1: i32) -> (i32, i32) {
    %c0_i32 = arith.constant 0 : i32
    return %arg0, %arg1 : i32, i32
  }
  func.func @transform_3(%arg0: i32, %arg1: i32) -> (i32, i32) {
    %c0_i32 = arith.constant 0 : i32
    %c0_i32_0 = arith.constant 0 : i32
    return %arg0, %c0_i32 : i32, i32
  }
}

</mosaic_0001>

<bundles_post_ra>
// kernel: tpu_custom_call.1
= control target key start
LH: loop header
LB: loop body
LE: loop exit
PB: predicated region body
PF: predicated region fallthrough
CT: control target
= control target key end

     0   :  { %9 = vsyncpa [#allocation3], 0  ;;  %v221_v2 = vmov 0   ;;  %s285_s0 = inlined_call_operand.vmem [shape: s32[32,1], index: 0, kind: input, shape index: {}]   ;;  %s286_s1 = inlined_call_operand.vmem [shape: s32[1,128], index: 1, kind: input, shape index: {}]   ;;  %s287_s2 = inlined_call_operand.hbm [shape: s8[32,128], index: 2, kind: output, shape index: {0}]   ;;  %s288_s3 = inlined_call_operand.hbm [shape: s32[32,128], index: 3, kind: output, shape index: {1}]  }
   0x1   :  { %v27_v0 = vld [vmem:[%s285_s0 + $0x10] sm:$0xff]  ;;  %v25_v1 = vld [vmem:[%s285_s0] sm:$0xff]  ;;  %168 = vset.pattern.permute.xlu1 %v221_v2  ;;  %167 = vset.pattern.permute.xlu0 %v221_v2 }
   0x2   :  { %10 = vsyncpa [#allocation5], 0  ;;  %37 = vperm.xlu1 %168, %v27_v0   ;;  %31 = vperm.xlu0 %167, %v25_v1   ;;  %v28_v3 = vld [vmem:[%s285_s0 + $0x18] sm:$0xff]  ;;  %v26_v4 = vld [vmem:[%s285_s0 + $0x8] sm:$0xff]  ;;  %s222_s0 = smov [#allocation2]  }
   0x3   :  { %v161_v5 = vld [vmem:[%s286_s1] ss:$0 sm:$0xff]  ;;  %s137_s1 = sshll.u32 %s222_s0, 4  ;;  %s138_s1 = int_to_ptr.vmem [resolvable:$true] %s137_s1 }
   0x4   :  { %s173_s22 = scalar_lea.vmem %s138_s1, 128  ;;  %p178_p1 = scmp.lt.s32.totalorder %s138_s1, %s138_s1 }
   0x5   :  { %p174_p0 = scmp.ne.s32.totalorder %s138_s1, %s173_s22  ;;  %p179_p2 = scmp.lt.s32.totalorder %s173_s22, %s173_s22 }
   0x6   :  { %40 = vperm.xlu1 %168, %v28_v3   ;;  %34 = vperm.xlu0 %167, %v26_v4  }
   0x7   :  { %p180_p3 = por %p179_p2, %p178_p1 }
   0x9   :  { %p181_p4 = pnand %p180_p3, %p174_p0 }
  0x81   :  { %v38_v6 = vpop.permute.xlu1 %37  ;;  %v32_v7 = vpop.permute.xlu0 %31 }
  0x82   :  { %vm48_vm0 = vcmp.eq.s32.totalorder %v38_v6, %v161_v5  ;;  %vm46_vm1 = vcmp.eq.s32.totalorder %v32_v7, %v161_v5 }
  0x83   :  { %v57_v8 = vsel %vm48_vm0, 1, %v221_v2  ;;  %v55_v9 = vsel %vm46_vm1, 1, %v221_v2 }
  0x84   :  { %v60_v10 = vshra.s32 %v55_v9, 16  ;;  %v88_v11 = vshra.s32 %v57_v8, 16  ;;  %v59_v23 = vand.u32 65535, %v55_v9  ;;  %v87_v24 = vand.u32 65535, %v57_v8 }
  0x85   :  { %v41_v12 = vpop.permute.xlu1 %40  ;;  %v35_v13 = vpop.permute.xlu0 %34 }
  0x86   :  { %vm49_vm2 = vcmp.eq.s32.totalorder %v41_v12, %v161_v5  ;;  %vm47_vm3 = vcmp.eq.s32.totalorder %v35_v13, %v161_v5  ;;  %v62_v14 = vcvt.s32.f32 %v60_v10  ;;  %v90_v17 = vcvt.s32.f32 %v88_v11 }
  0x87   :  { %vm51_vm4 = vmpackc.low %vm49_vm2, %vm48_vm0  ;;  %v58_v15 = vsel %vm49_vm2, 1, %v221_v2  ;;  %v56_v16 = vsel %vm47_vm3, 1, %v221_v2  ;;  %v61_v27 = vcvt.s32.f32 %v59_v23  ;;  %v89_v33 = vcvt.s32.f32 %v87_v24 }
  0x88   :  { %vm50_vm5 = vmpackc.low %vm47_vm3, %vm46_vm1  ;;  %63 = vmax.xlane.f32.xlu0 %v62_v14  ;;  %v74_v18 = vshra.s32 %v56_v16, 16  ;;  %v102_v20 = vshra.s32 %v58_v15, 16  ;;  %v73_v25 = vand.u32 65535, %v56_v16  ;;  %v101_v29 = vand.u32 65535, %v58_v15 }
  0x89   :  { %vm52_vm6 = vmpackc.even %vm51_vm4, %vm50_vm5 }
  0x8a   :  { %v76_v19 = vcvt.s32.f32 %v74_v18  ;;  %v53_v21 = vsel %vm52_vm6, 16843009, %v221_v2  ;;  %v104_v22 = vcvt.s32.f32 %v102_v20  ;;  %v75_v32 = vcvt.s32.f32 %v73_v25 }
  0x8b   :  { %54 = vst [vmem:[#allocation2] sm:$0xff] %v53_v21  ;;  %v103_v37 = vcvt.s32.f32 %v101_v29 }
  0x8c   :  { %91 = vmax.xlane.f32.xlu0 %v90_v17  ;;  %77 = vmax.xlane.f32.xlu1 %v76_v19 }
  0x90   :  { %105 = vmax.xlane.f32.xlu0 %v104_v22 }
 0x115   :  { %v64_v26 = vpop.xlane.xlu0 %63 }
 0x116   :  { %vm65_vm7 = vcmp.eq.f32.partialorder %v62_v14, %v64_v26 }
 0x117   :  { %v66_v28 = vsel %vm65_vm7, %v61_v27, -inf }
 0x118   :  { %67 = vmax.xlane.f32.xlu1 %v66_v28 }
 0x119   :  { %v78_v30 = vpop.xlane.xlu1 %77  ;;  %v92_v31 = vpop.xlane.xlu0 %91 }
 0x11a   :  { %vm79_vm8 = vcmp.eq.f32.partialorder %v76_v19, %v78_v30  ;;  %vm93_vm9 = vcmp.eq.f32.partialorder %v90_v17, %v92_v31 }
 0x11b   :  { %v80_v34 = vsel %vm79_vm8, %v75_v32, -inf  ;;  %v94_v35 = vsel %vm93_vm9, %v89_v33, -inf }
 0x11c   :  { %81 = vmax.xlane.f32.xlu0 %v80_v34  ;;  %95 = vmax.xlane.f32.xlu1 %v94_v35 }
 0x11d   :  { %v106_v36 = vpop.xlane.xlu0 %105 }
 0x11e   :  { %vm107_vm10 = vcmp.eq.f32.partialorder %v104_v22, %v106_v36 }
 0x11f   :  { %v108_v38 = vsel %vm107_vm10, %v103_v37, -inf }
 0x120   :  { %109 = vmax.xlane.f32.xlu0 %v108_v38 }
 0x121   :  { %184 = shalt.err (!%p181_p4)
}
 0x122   :  { %s185_s25 = scalar_lea.hbm %s287_s2, 128 }
 0x123   :  { %p186_p5 = scmp.ne.s32.totalorder %s287_s2, %s185_s25  ;;  %p189_p6 = scmp.lt.u32.totalorder %s185_s25, %s287_s2 }
 0x125   :  { %p191_p7 = pnand %p189_p6, %p186_p5 }
 0x127   :  { %194 = shalt.err (!%p191_p7)
}
 0x128   :  { %140 = dma.vmem_to_hbm [thread:$0]  %s138_s1, 128, %s287_s2, [#allocation3]   ;;  %v70_v39 = vcvt.f32.s32 %v64_v26  ;;  %v84_v40 = vcvt.f32.s32 %v78_v30  ;;  %v98_v41 = vcvt.f32.s32 %v92_v31  ;;  %v112_v50 = vcvt.f32.s32 %v106_v36 }
 0x129   :  { %s223_s2 = smov [#allocation4]  }
 0x12a   :  { %v71_v43 = vshll.u32 %v70_v39, 16  ;;  %v85_v46 = vshll.u32 %v84_v40, 16  ;;  %v99_v47 = vshll.u32 %v98_v41, 16  ;;  %v113_v57 = vshll.u32 %v112_v50, 16  ;;  %s146_s5 = sshll.u32 %s223_s2, 4  ;;  %s147_s5 = int_to_ptr.vmem [resolvable:$true] %s146_s5 }
 0x12b   :  { %s195_s6 = scalar_lea.vmem %s147_s5, 512  ;;  %p200_p9 = scmp.lt.s32.totalorder %s147_s5, %s147_s5 }
 0x12c   :  { %p196_p8 = scmp.ne.s32.totalorder %s147_s5, %s195_s6  ;;  %p201_p10 = scmp.lt.s32.totalorder %s195_s6, %s195_s6 }
 0x12e   :  { %p202_p11 = por %p201_p10, %p200_p9 }
 0x130   :  { %p203_p12 = pnand %p202_p11, %p196_p8 }
 0x1a5   :  { %v68_v42 = vpop.xlane.xlu1 %67 }
 0x1a6   :  { %v69_v44 = vcvt.f32.s32 %v68_v42 }
 0x1a8   :  { %v72_v45 = vadd.s32 %v71_v43, %v69_v44 }
 0x1a9   :  { %v96_v48 = vpop.xlane.xlu1 %95  ;;  %v82_v49 = vpop.xlane.xlu0 %81 }
 0x1aa   :  { %vm169_vm11 = vcmp.lt.s32.totalorder %v72_v45, 0  ;;  %v97_v51 = vcvt.f32.s32 %v96_v48  ;;  %v83_v52 = vcvt.f32.s32 %v82_v49 }
 0x1ab   :  { %v120_v53 = vsel %vm169_vm11, 0, %v72_v45 }
 0x1ac   :  { %127 = vst [vmem:[#allocation4] sm:$0xff] %v120_v53  ;;  %v100_v54 = vadd.s32 %v99_v47, %v97_v51  ;;  %v86_v55 = vadd.s32 %v85_v46, %v83_v52 }
 0x1ad   :  { %v110_v56 = vpop.xlane.xlu0 %109 }
 0x1ae   :  { %vm170_vm12 = vcmp.lt.s32.totalorder %v100_v54, 0  ;;  %vm171_vm13 = vcmp.lt.s32.totalorder %v86_v55, 0  ;;  %v111_v58 = vcvt.f32.s32 %v110_v56 }
 0x1af   :  { %v124_v59 = vsel %vm170_vm12, 0, %v100_v54  ;;  %v122_v60 = vsel %vm171_vm13, 0, %v86_v55 }
 0x1b0   :  { %129 = vst [vmem:[#allocation4 + $0x10] sm:$0xff] %v124_v59  ;;  %128 = vst [vmem:[#allocation4 + $0x8] sm:$0xff] %v122_v60  ;;  %v114_v61 = vadd.s32 %v113_v57, %v111_v58 }
 0x1b2   :  { %vm172_vm14 = vcmp.lt.s32.totalorder %v114_v61, 0 }
 0x1b3   :  { %v126_v62 = vsel %vm172_vm14, 0, %v114_v61 }
 0x1b4   :  { %130 = vst [vmem:[#allocation4 + $0x18] sm:$0xff] %v126_v62 }
 0x1b5   :  { %206 = shalt.err (!%p203_p12)
}
 0x1b6   :  { %s207_s9 = scalar_lea.hbm %s288_s3, 512 }
 0x1b7   :  { %p208_p13 = scmp.ne.s32.totalorder %s288_s3, %s207_s9  ;;  %p211_p0 = scmp.lt.u32.totalorder %s207_s9, %s288_s3 }
 0x1b9   :  { %p213_p1 = pnand %p211_p0, %p208_p13 }
 0x1bb   :  { %216 = shalt.err (!%p213_p1)
}
 0x1bc   :  { %s224_s14 = smov 128   ;;  %s225_s15 = smov 8  }
 0x1bd   :  { %152 = dma.vmem_to_hbm [thread:$0]  %s147_s5, 512, %s288_s3, [#allocation5], %s224_s14, %s224_s14, %s225_s15  }
 0x1be   :  { %217 = dma.done.wait [#allocation3], 128  }
 0x1bf   :  { %218 = vsyncadd [#allocation3], 4294967168 }
 0x1c0   :  { %219 = dma.done.wait [#allocation5], 512  }
 0x1c1   :  { %220 = vsyncadd [#allocation5], 4294966784 }
 0x1c2   :  { %159 = vsyncpa [#allocation3], 1 }
 0x1c3   :  { %160 = vsyncpa [#allocation5], 1 }

</bundles_post_ra>
